<compile_context>
chip_gen: v7x
topology: tpu7x:2x2x1
jax: 0.10.0
libtpu: 0.0.40
codegen_flags: <defaults>
</compile_context>

<pallas_src>
import jax
import jax.numpy as jnp
from jax.experimental import pallas as pl
from jax.experimental.pallas import tpu as pltpu

IN_FEATURES = 2 * 3 * 3   # 18
LATENT_SIZE = 512
OUT_FEATURES = 1
LANE = 128                # TPU lane width


def _round_up(n, m):
    return ((n + m - 1) // m) * m


def coptic_fused_kernel(xt_ref, w_ref, b_ref, o_ref):
    # xt_ref: (18, TB) f32  -- batch on the 128-lane axis
    # w_ref:  (18, 1)  f32  -- fused (conv -> linear) weight column, resident in VMEM
    # b_ref:  (1,)     f32  -- fused bias, SMEM scalar
    # o_ref:  (1, TB)  f32  -- lane-dense output row
    prod = xt_ref[...] * w_ref[...]                                  # VPU lane-broadcast mul
    o_ref[...] = jnp.sum(prod, axis=0, keepdims=True) + b_ref[0]     # XLU sublane reduce


def coptic_forward(x, w1, b1, w2, b2, *, tile_b=4096):
    """x: (B, 18) f32; w1: (18, 512); b1: (512,); w2: (512, 1); b2: (1,)."""
    B = x.shape[0]
    hi = jax.lax.Precision.HIGHEST  # one-off fusion matmuls in full f32

    # Algebraic fusion of conv-as-linear + final linear (eval-mode dropout == identity).
    w_f = jnp.dot(w1, w2, precision=hi).astype(jnp.float32)            # (18, 1)
    b_f = (jnp.dot(b1, w2, precision=hi) + b2).astype(jnp.float32)     # (1,)

    # Batch tile: batch lives on the lane axis. For small B a single full-extent block;
    # otherwise a multiple of 128, capped at tile_b and sized so large batches give >=4
    # grid steps (megacore sharding on v7x).
    if B <= LANE:
        TB = B
        B_pad = B
    else:
        TB = max(LANE, min(_round_up(tile_b, LANE), _round_up(pl.cdiv(B, 4), LANE)))
        B_pad = _round_up(B, TB)

    # Transposed (18, B) layout; pad (<= one tile of an 18-row slab) fuses with the
    # transpose copy, so no extra HBM pass over x.
    x_t = x.T
    if B_pad != B:
        x_t = jnp.pad(x_t, ((0, 0), (0, B_pad - B)))

    grid = (B_pad // TB,)
    out = pl.pallas_call(
        coptic_fused_kernel,
        out_shape=jax.ShapeDtypeStruct((1, B_pad), jnp.float32),
        grid_spec=pltpu.PrefetchScalarGridSpec(
            num_scalar_prefetch=0,
            grid=grid,
            in_specs=[
                pl.BlockSpec((IN_FEATURES, TB), lambda i: (0, i)),
                # Fused weight column: constant index_map -> DMA'd once, resident.
                pl.BlockSpec((IN_FEATURES, OUT_FEATURES), lambda i: (0, 0)),
                pl.BlockSpec(memory_space=pltpu.MemorySpace.SMEM),
            ],
            out_specs=pl.BlockSpec((1, TB), lambda i: (0, i)),
        ),
        compiler_params=pltpu.CompilerParams(
            dimension_semantics=("parallel",),
            vmem_limit_bytes=32 * 1024 * 1024,
        ),
    )(x_t, w_f, b_f)
    return out[0, :B].reshape(B, OUT_FEATURES)


def init_params(key):
    """Deterministic init mimicking torch Conv2d/Linear (uniform +/- 1/sqrt(fan_in))."""
    k1, k2, k3, k4 = jax.random.split(key, 4)
    bound1 = 1.0 / jnp.sqrt(float(IN_FEATURES))    # conv fan_in = 2*3*3
    bound2 = 1.0 / jnp.sqrt(float(LATENT_SIZE))
    # Conv weight stored pre-flattened & transposed as (18, 512).
    w1 = jax.random.uniform(k1, (IN_FEATURES, LATENT_SIZE), jnp.float32, -bound1, bound1)
    b1 = jax.random.uniform(k2, (LATENT_SIZE,), jnp.float32, -bound1, bound1)
    w2 = jax.random.uniform(k3, (LATENT_SIZE, OUT_FEATURES), jnp.float32, -bound2, bound2)
    b2 = jax.random.uniform(k4, (OUT_FEATURES,), jnp.float32, -bound2, bound2)
    return w1, b1, w2, b2


def reference_forward(x, w1, b1, w2, b2):
    hi = jax.lax.Precision.HIGHEST
    h = jnp.dot(x, w1, precision=hi) + b1          # conv-as-linear (no activation in Coptic)
    return jnp.dot(h, w2, precision=hi) + b2       # dropout is identity in eval mode


if __name__ == "__main__":
    key = jax.random.PRNGKey(0)
    kx, kp, kx2 = jax.random.split(key, 3)
    w1, b1, w2, b2 = init_params(kp)

    # Small batch (non-multiple of 8/128) -> single full-extent block path.
    batch = 10
    x = jax.random.normal(kx, (batch, IN_FEATURES), jnp.float32)
    out = jax.block_until_ready(coptic_forward(x, w1, b1, w2, b2))
    ref = reference_forward(x, w1, b1, w2, b2)
    assert out.shape == (batch, OUT_FEATURES)
    assert jnp.allclose(out, ref, atol=1e-4, rtol=1e-4), float(jnp.max(jnp.abs(out - ref)))

    # Larger batch -> multi-step (tiled) path with a lane-padded trailing tile.
    batch2 = 300
    x2 = jax.random.normal(kx2, (batch2, IN_FEATURES), jnp.float32)
    out2 = jax.block_until_ready(coptic_forward(x2, w1, b1, w2, b2))
    ref2 = reference_forward(x2, w1, b1, w2, b2)
    assert out2.shape == (batch2, OUT_FEATURES)
    assert jnp.allclose(out2, ref2, atol=1e-4, rtol=1e-4), float(jnp.max(jnp.abs(out2 - ref2)))

    print("KERNEL_OK")
</pallas_src>

<mosaic_0001>
module attributes {stable_mosaic.version = 11 : i64} {
  func.func @coptic_fused_kernel(%arg0: i32, %arg1: memref<18x10xf32, #tpu.memory_space<vmem>>, %arg2: memref<18x1xf32, #tpu.memory_space<vmem>>, %arg3: memref<1xf32, #tpu.memory_space<smem>>, %arg4: memref<1x10xf32, #tpu.memory_space<vmem>>) attributes {dimension_semantics = [#tpu.dimension_semantics<parallel>], iteration_bounds = array<i64: 1>, scalar_prefetch = 0 : i64, scratch_operands = 0 : i64, tpu.core_type = #tpu.core_type<tc>, window_params = [{transform_indices = @transform_0, window_bounds = array<i64: 18, 10>}, {pipeline_mode = #tpu.pipeline_mode<synchronous>, transform_indices = @transform_1, window_bounds = array<i64: 18, 1>}, {transform_indices = @transform_2, window_bounds = array<i64: 1>}, {transform_indices = @transform_3, window_bounds = array<i64: 1, 10>}]} {
    %c0 = arith.constant 0 : index
    %c0_0 = arith.constant 0 : index
    %0 = vector.load %arg1[%c0, %c0_0] : memref<18x10xf32, #tpu.memory_space<vmem>>, vector<18x10xf32>
    %c0_1 = arith.constant 0 : index
    %c0_2 = arith.constant 0 : index
    %1 = vector.load %arg2[%c0_1, %c0_2] : memref<18x1xf32, #tpu.memory_space<vmem>>, vector<18x1xf32>
    %2 = vector.broadcast %1 : vector<18x1xf32> to vector<18x10xf32>
    %3 = arith.mulf %0, %2 : vector<18x10xf32>
    %cst = arith.constant dense<0.000000e+00> : vector<10xf32>
    %4 = vector.multi_reduction <add>, %3, %cst [0] : vector<18x10xf32> to vector<10xf32>
    %5 = vector.shape_cast %4 : vector<10xf32> to vector<1x10xf32>
    %c0_3 = arith.constant 0 : index
    %6 = memref.load %arg3[%c0_3] : memref<1xf32, #tpu.memory_space<smem>>
    %7 = vector.broadcast %6 : f32 to vector<1x10xf32>
    %8 = arith.addf %5, %7 : vector<1x10xf32>
    %c0_4 = arith.constant 0 : index
    %c0_5 = arith.constant 0 : index
    %9 = vector.load %arg4[%c0_4, %c0_5] : memref<1x10xf32, #tpu.memory_space<vmem>>, vector<1x10xf32>
    tpu.vector_store %arg4[%c0_4, %c0_5], %8 {strides = array<i32>} : memref<1x10xf32, #tpu.memory_space<vmem>>, vector<1x10xf32>,
    return
  }
  func.func @transform_0(%arg0: i32) -> (i32, i32) {
    %c0_i32 = arith.constant 0 : i32
    %c0_i32_0 = arith.constant 0 : i32
    return %c0_i32, %arg0 : i32, i32
  }
  func.func @transform_1(%arg0: i32) -> (i32, i32) {
    %c0_i32 = arith.constant 0 : i32
    %c0_i32_0 = arith.constant 0 : i32
    %c0_i32_1 = arith.constant 0 : i32
    return %c0_i32, %c0_i32_0 : i32, i32
  }
  func.func @transform_2(%arg0: i32) -> i32 {
    %c0_i32 = arith.constant 0 : i32
    %c0_i32_0 = arith.constant 0 : i32
    return %c0_i32 : i32
  }
  func.func @transform_3(%arg0: i32) -> (i32, i32) {
    %c0_i32 = arith.constant 0 : i32
    %c0_i32_0 = arith.constant 0 : i32
    return %c0_i32, %arg0 : i32, i32
  }
}

</mosaic_0001>

<bundles_post_ra>
// kernel: tpu_custom_call.1
= control target key start
LH: loop header
LB: loop body
LE: loop exit
PB: predicated region body
PF: predicated region fallthrough
CT: control target
= control target key end

     0   :  { %v100_v2 = vmov 0   ;;  %s155_s0 = inlined_call_operand.vmem [shape: f32[18,10], index: 0, kind: input, shape index: {}]   ;;  %s156_s1 = inlined_call_operand.vmem [shape: f32[18,1], index: 1, kind: input, shape index: {}]   ;;  %s157_s2 = inlined_call_operand.<no memory space> [shape: f32[1], index: 2, kind: input, shape index: {}]   ;;  %s158_s3 = inlined_call_operand.hbm [shape: f32[1,10], index: 3, kind: output, shape index: {}]  }
   0x1   :  { %v19_v0 = vld [vmem:[%s156_s1] sm:$0xff]  ;;  %v21_v1 = vld [vmem:[%s156_s1 + $0x10] sm:$0x3]  ;;  %74 = vset.pattern.permute.xlu0 %v100_v2  ;;  %75 = vset.pattern.permute.xlu1 %v100_v2 }
   0x2   :  { %9 = vsyncpa [#allocation4], 0  ;;  %24 = vperm.xlu0 %74, %v19_v0   ;;  %34 = vperm.xlu1 %75, %v21_v1   ;;  %v20_v3 = vld [vmem:[%s156_s1 + $0x8] sm:$0xff]  ;;  %v16_v5 = vld [vmem:[%s155_s0] sm:$0xff]  ;;  %vm40_vm0 = vcmask 80896   ;;  %vm44_vm1 = vcmask 74752   ;;  %v54_v23 = vstv %s157_s2 }
   0x3   :  { %v18_v7 = vld [vmem:[%s155_s0 + $0x10] sm:$0x3]  ;;  %v17_v8 = vld [vmem:[%s155_s0 + $0x8] sm:$0xff]  ;;  %s101_s0 = smov [#allocation3]   ;;  %vm56_vm2 = vcmask 73728  }
   0x4   :  { %s64_s25 = sshll.u32 %s101_s0, 4  ;;  %s65_s25 = int_to_ptr.vmem [resolvable:$true] %s64_s25 }
   0x5   :  { %s76_s26 = scalar_lea.vmem %s65_s25, 16  ;;  %s80_s27 = scalar_lea.vmem %s65_s25, 32 }
   0x6   :  { %29 = vperm.xlu0 %74, %v20_v3   ;;  %p77_p0 = scmp.ne.s32.totalorder %s65_s25, %s76_s26  ;;  %p81_p1 = scmp.lt.s32.totalorder %s65_s25, %s65_s25 }
   0x7   :  { %p82_p2 = scmp.lt.s32.totalorder %s80_s27, %s76_s26 }
   0x9   :  { %p83_p3 = por %p82_p2, %p81_p1 }
   0xb   :  { %p84_p4 = pnand %p83_p3, %p77_p0 }
  0x81   :  { %v25_v4 = vpop.permute.xlu0 %24  ;;  %v35_v6 = vpop.permute.xlu1 %34 }
  0x82   :  { %v37_v9 = vmul.f32 %v25_v4, %v16_v5  ;;  %v39_v10 = vmul.f32 %v35_v6, %v18_v7 }
  0x84   :  { %v41_v13 = vsel %vm40_vm0, %v37_v9, 0.0  ;;  %v45_v15 = vsel %vm44_vm1, %v39_v10, 0.0 }
  0x85   :  { %v30_v11 = vpop.permute.xlu0 %29 }
  0x86   :  { %v38_v12 = vmul.f32 %v30_v11, %v17_v8 }
  0x88   :  { %v42_v14 = vsel %vm40_vm0, %v38_v12, 0.0 }
  0x89   :  { %v43_v16 = vadd.f32 %v42_v14, %v41_v13 }
  0x8b   :  { %v46_v17 = vadd.f32 %v45_v15, %v43_v16 }
  0x8d   :  { %v47_v18 = vrot.slane %v46_v17, 4 }
  0x8f   :  { %v48_v19 = vadd.f32 %v47_v18, %v46_v17 }
  0x91   :  { %v49_v20 = vrot.slane %v48_v19, 2 }
  0x93   :  { %v50_v21 = vadd.f32 %v49_v20, %v48_v19 }
  0x95   :  { %v51_v22 = vrot.slane %v50_v21, 1 }
  0x97   :  { %v52_v24 = vadd.f32 %v51_v22, %v50_v21 }
  0x99   :  { %v55_v25 = vadd.f32 %v54_v23, %v52_v24 }
  0x9b   :  { %57 = vst.msk [vmem:[#allocation3] sm:$0x1] %vm56_vm2, %v55_v25 }
  0x9c   :  { %87 = shalt.err (!%p84_p4)
}
  0x9d   :  { %s88_s30 = scalar_lea.hbm %s158_s3, 16 }
  0x9e   :  { %p89_p5 = scmp.ne.s32.totalorder %s158_s3, %s88_s30  ;;  %p92_p6 = scmp.lt.u32.totalorder %s88_s30, %s158_s3 }
  0xa0   :  { %p94_p7 = pnand %p92_p6, %p89_p5 }
  0xa2   :  { %97 = shalt.err (!%p94_p7)
}
  0xa3   :  { %67 = dma.vmem_to_hbm [thread:$0]  %s65_s25, 16, %s158_s3, [#allocation4]  }
  0xa4   :  { %98 = dma.done.wait [#allocation4], 16  }
  0xa5   :  { %99 = vsyncadd [#allocation4], 4294967280 }
  0xa6   :  { %71 = vsyncpa [#allocation4], 1 }

</bundles_post_ra>
